<compile_context>
chip_gen: v6e
topology: v6e:2x2x1
jax: 0.10.0
libtpu: 0.0.40
codegen_flags: <defaults>
</compile_context>

<pallas_src>
import jax
import jax.numpy as jnp
from jax.experimental import pallas as pl
from jax.experimental.pallas import tpu as pltpu


def _vnet_mlp_kernel(x_ref, w1_ref, b1_ref, w2_ref, b2_ref, w3_ref, b3_ref,
                     o_ref):
    # Feature-major: x_ref is (D_in, TB), weights are pre-transposed so every
    # matmul emits (H, TB) with batch on the lane axis.
    h1 = (jnp.dot(w1_ref[...], x_ref[...],
                  preferred_element_type=jnp.float32)
          + b1_ref[...])                       # (H, TB) + (H, 1) lane-bcast
    h1 = jax.nn.silu(h1)                       # full-lane VPU/EUP work
    h2 = (jnp.dot(w2_ref[...], h1,
                  preferred_element_type=jnp.float32)
          + b2_ref[...])
    h2 = jax.nn.silu(h2)
    # Layer 3: VPU multiply + sublane (XLU) reduce over H -> lane-dense row.
    v = jnp.sum(h2 * w3_ref[...], axis=0, keepdims=True) + b3_ref[...]
    o_ref[...] = v.astype(o_ref.dtype)         # (1, TB), unmasked dense vst


_MAX_TB = 4096  # (D_in + 2H) * 4096 * 4B of live activation ~= 1.5 MiB @ H=32


def _batch_tile(B: int) -> int:
    """Pick the batch tile (lane width of every block).

    - Small B: one grid step, TB == B (block == full dim, so the (8,128)
      constraint is satisfied without padding).
    - Large B: >=2 grid steps (v7x megacore sharding), TB a multiple of 128
      (lane-dense blocks), capped at _MAX_TB to bound per-step VMEM.
    """
    if B <= 256:
        return B
    tb = -(-B // 2)                     # cdiv(B, 2): at least two steps
    tb = ((tb + 127) // 128) * 128      # lane-dense multiple of 128
    return min(tb, _MAX_TB)


def _vmem_limit_bytes(TB: int, D_in: int, H: int) -> int:
    """Scoped-VMEM budget from actual buffer sizes (not a blind constant)."""
    f32 = 4
    pipelined = 2 * (D_in * TB + 1 * TB) * f32            # x + out, 2 buffers
    resident = (H * D_in + H + H * H + H + H + 1) * f32   # single-buffered
    activations = 2 * H * TB * f32                        # h1 / h2 temporaries
    est = pipelined + resident + activations
    # 2x headroom + 4 MiB for compiler scratch; keep >= default 32 MiB so we
    # never *tighten* the limit, and cap below v7x's 64 MiB physical VMEM.
    return min(max(2 * est + (4 << 20), 32 << 20), 48 << 20)


def vnetwork_forward(state, condition, params):
    """VNetwork.forward: Identity encoders + fused 3-layer-MLP backbone."""
    B, _ = state.shape
    if condition is None:
        x = state
    else:
        x = jnp.concatenate([state, condition], axis=-1)   # (B, D_in), tiny
    D_in = x.shape[1]
    H = params["w1"].shape[1]

    # Feature-major staging (all cheap / layout-only on these shapes):
    xT = x.T                                   # (D_in, B): batch -> lanes
    w1T = params["w1"].T                       # (H, D_in)
    w2T = params["w2"].T                       # (H, H)
    b1c = jnp.reshape(params["b1"], (H, 1))    # row -> column (free reshape)
    b2c = jnp.reshape(params["b2"], (H, 1))
    w3c = jnp.reshape(params["w3"], (H, 1))
    b3c = jnp.reshape(params["b3"], (1, 1))

    TB = _batch_tile(B)
    grid = (pl.cdiv(B, TB),)

    # Resident weights: constant index_map, fetched once; single-buffered so
    # they don't cost 2x VMEM (matters once H grows on v7x's 64 MiB VMEM).
    def resident(shape):
        return pl.BlockSpec(shape, lambda i: (0, 0),
                            pipeline_mode=pl.Buffered(1))

    out_row = pl.pallas_call(
        _vnet_mlp_kernel,
        out_shape=jax.ShapeDtypeStruct((1, B), jnp.float32),
        grid=grid,
        in_specs=[
            pl.BlockSpec((D_in, TB), lambda i: (0, i)),   # x tile (pipelined)
            resident((H, D_in)),                          # w1^T
            resident((H, 1)),                             # b1 (column)
            resident((H, H)),                             # w2^T
            resident((H, 1)),                             # b2 (column)
            resident((H, 1)),                             # w3 (column)
            resident((1, 1)),                             # b3
        ],
        out_specs=pl.BlockSpec((1, TB), lambda i: (0, i)),  # lane-dense row
        compiler_params=pltpu.CompilerParams(
            dimension_semantics=("parallel",),   # megacore-shard batch tiles
            vmem_limit_bytes=_vmem_limit_bytes(TB, D_in, H),
        ),
    )(xT, w1T, b1c, w2T, b2c, w3c, b3c)

    # (1, B) and (B, 1) share the same row-major bytes -> free reshape.
    return out_row.reshape(B, 1)


def init_params(key, d_in, hidden):
    """Deterministic synthetic parameter init (PyTorch-Linear-like scale)."""
    ks = jax.random.split(key, 6)

    def lin(kw, kb, fan_in, fan_out):
        lim = 1.0 / jnp.sqrt(fan_in)
        w = jax.random.uniform(kw, (fan_in, fan_out), jnp.float32, -lim, lim)
        b = jax.random.uniform(kb, (1, fan_out), jnp.float32, -lim, lim)
        return w, b

    w1, b1 = lin(ks[0], ks[1], d_in, hidden)
    w2, b2 = lin(ks[2], ks[3], hidden, hidden)
    w3, b3 = lin(ks[4], ks[5], hidden, 1)
    return {"w1": w1, "b1": b1, "w2": w2, "b2": b2, "w3": w3, "b3": b3}


def _reference(state, condition, p):
    x = jnp.concatenate([state, condition], axis=-1)
    h1 = jax.nn.silu(x @ p["w1"] + p["b1"])
    h2 = jax.nn.silu(h1 @ p["w2"] + p["b2"])
    return h2 @ p["w3"] + p["b3"]


def _check(B, state_dim, cond_dim, params, key):
    k_s, k_c = jax.random.split(key)
    state = jax.random.normal(k_s, (B, state_dim), jnp.float32)
    condition = jax.random.normal(k_c, (B, cond_dim), jnp.float32)
    value = jax.block_until_ready(vnetwork_forward(state, condition, params))
    ref = _reference(state, condition, params)
    assert value.shape == (B, 1), value.shape
    assert jnp.allclose(value, ref, atol=1e-5, rtol=1e-5), f"mismatch @ B={B}"


if __name__ == "__main__":
    key = jax.random.PRNGKey(0)
    k_p, k1, k2, k3 = jax.random.split(key, 4)

    state_dim, cond_dim, hidden = 16, 16, 32
    params = init_params(k_p, state_dim + cond_dim, hidden)

    # Small single-step grid (TB == B == 8).
    _check(8, state_dim, cond_dim, params, k1)
    # Multi-step pipelined grid: B=2048 -> TB=1024, 2 parallel grid steps.
    _check(2048, state_dim, cond_dim, params, k2)
    # Ragged batch: B=300 -> TB=256, 2 steps, partial (masked) last block.
    _check(300, state_dim, cond_dim, params, k3)

    print("KERNEL_OK")
</pallas_src>

<mosaic_0001>
module attributes {stable_mosaic.version = 11 : i64} {
  func.func @_vnet_mlp_kernel(%arg0: i32, %arg1: memref<32x8xf32, #tpu.memory_space<vmem>>, %arg2: memref<32x32xf32, #tpu.memory_space<vmem>>, %arg3: memref<32x1xf32, #tpu.memory_space<vmem>>, %arg4: memref<32x32xf32, #tpu.memory_space<vmem>>, %arg5: memref<32x1xf32, #tpu.memory_space<vmem>>, %arg6: memref<32x1xf32, #tpu.memory_space<vmem>>, %arg7: memref<1x1xf32, #tpu.memory_space<vmem>>, %arg8: memref<1x8xf32, #tpu.memory_space<vmem>>) attributes {dimension_semantics = [#tpu.dimension_semantics<parallel>], iteration_bounds = array<i64: 1>, scalar_prefetch = 0 : i64, scratch_operands = 0 : i64, tpu.core_type = #tpu.core_type<tc>, window_params = [{transform_indices = @transform_0, window_bounds = array<i64: 32, 8>}, {pipeline_mode = #tpu.pipeline_mode<synchronous>, transform_indices = @transform_1, window_bounds = array<i64: 32, 32>}, {pipeline_mode = #tpu.pipeline_mode<synchronous>, transform_indices = @transform_2, window_bounds = array<i64: 32, 1>}, {pipeline_mode = #tpu.pipeline_mode<synchronous>, transform_indices = @transform_3, window_bounds = array<i64: 32, 32>}, {pipeline_mode = #tpu.pipeline_mode<synchronous>, transform_indices = @transform_4, window_bounds = array<i64: 32, 1>}, {pipeline_mode = #tpu.pipeline_mode<synchronous>, transform_indices = @transform_5, window_bounds = array<i64: 32, 1>}, {pipeline_mode = #tpu.pipeline_mode<synchronous>, transform_indices = @transform_6, window_bounds = array<i64: 1, 1>}, {transform_indices = @transform_7, window_bounds = array<i64: 1, 8>}]} {
    %c0 = arith.constant 0 : index
    %c0_0 = arith.constant 0 : index
    %0 = vector.load %arg2[%c0, %c0_0] : memref<32x32xf32, #tpu.memory_space<vmem>>, vector<32x32xf32>
    %c0_1 = arith.constant 0 : index
    %c0_2 = arith.constant 0 : index
    %1 = vector.load %arg1[%c0_1, %c0_2] : memref<32x8xf32, #tpu.memory_space<vmem>>, vector<32x8xf32>
    %cst = arith.constant dense<0.000000e+00> : vector<32x8xf32>
    %2 = tpu.matmul %0, %1, %cst {dimension_numbers = #tpu.dot_dimension_numbers<[1], [0], [0], [1], [0, 0, 1, 1], [], []>} : vector<32x32xf32>, vector<32x8xf32>, vector<32x8xf32> -> vector<32x8xf32>
    %c0_3 = arith.constant 0 : index
    %c0_4 = arith.constant 0 : index
    %3 = vector.load %arg3[%c0_3, %c0_4] : memref<32x1xf32, #tpu.memory_space<vmem>>, vector<32x1xf32>
    %4 = vector.broadcast %3 : vector<32x1xf32> to vector<32x8xf32>
    %5 = arith.addf %2, %4 : vector<32x8xf32>
    %6 = arith.negf %5 : vector<32x8xf32>
    %7 = math.exp %6 : vector<32x8xf32>
    %cst_5 = arith.constant 1.000000e+00 : f32
    %8 = vector.broadcast %cst_5 : f32 to vector<32x8xf32>
    %9 = arith.addf %8, %7 : vector<32x8xf32>
    %10 = arith.divf %8, %9 : vector<32x8xf32>
    %11 = arith.mulf %5, %10 : vector<32x8xf32>
    %c0_6 = arith.constant 0 : index
    %c0_7 = arith.constant 0 : index
    %12 = vector.load %arg4[%c0_6, %c0_7] : memref<32x32xf32, #tpu.memory_space<vmem>>, vector<32x32xf32>
    %cst_8 = arith.constant dense<0.000000e+00> : vector<32x8xf32>
    %13 = tpu.matmul %12, %11, %cst_8 {dimension_numbers = #tpu.dot_dimension_numbers<[1], [0], [0], [1], [0, 0, 1, 1], [], []>} : vector<32x32xf32>, vector<32x8xf32>, vector<32x8xf32> -> vector<32x8xf32>
    %c0_9 = arith.constant 0 : index
    %c0_10 = arith.constant 0 : index
    %14 = vector.load %arg5[%c0_9, %c0_10] : memref<32x1xf32, #tpu.memory_space<vmem>>, vector<32x1xf32>
    %15 = vector.broadcast %14 : vector<32x1xf32> to vector<32x8xf32>
    %16 = arith.addf %13, %15 : vector<32x8xf32>
    %17 = arith.negf %16 : vector<32x8xf32>
    %18 = math.exp %17 : vector<32x8xf32>
    %cst_11 = arith.constant 1.000000e+00 : f32
    %19 = vector.broadcast %cst_11 : f32 to vector<32x8xf32>
    %20 = arith.addf %19, %18 : vector<32x8xf32>
    %21 = arith.divf %19, %20 : vector<32x8xf32>
    %22 = arith.mulf %16, %21 : vector<32x8xf32>
    %c0_12 = arith.constant 0 : index
    %c0_13 = arith.constant 0 : index
    %23 = vector.load %arg6[%c0_12, %c0_13] : memref<32x1xf32, #tpu.memory_space<vmem>>, vector<32x1xf32>
    %24 = vector.broadcast %23 : vector<32x1xf32> to vector<32x8xf32>
    %25 = arith.mulf %22, %24 : vector<32x8xf32>
    %cst_14 = arith.constant dense<0.000000e+00> : vector<8xf32>
    %26 = vector.multi_reduction <add>, %25, %cst_14 [0] : vector<32x8xf32> to vector<8xf32>
    %27 = vector.shape_cast %26 : vector<8xf32> to vector<1x8xf32>
    %c0_15 = arith.constant 0 : index
    %c0_16 = arith.constant 0 : index
    %28 = vector.load %arg7[%c0_15, %c0_16] : memref<1x1xf32, #tpu.memory_space<vmem>>, vector<1x1xf32>
    %29 = vector.broadcast %28 : vector<1x1xf32> to vector<1x8xf32>
    %30 = arith.addf %27, %29 : vector<1x8xf32>
    %c0_17 = arith.constant 0 : index
    %c0_18 = arith.constant 0 : index
    %31 = vector.load %arg8[%c0_17, %c0_18] : memref<1x8xf32, #tpu.memory_space<vmem>>, vector<1x8xf32>
    tpu.vector_store %arg8[%c0_17, %c0_18], %30 {strides = array<i32>} : memref<1x8xf32, #tpu.memory_space<vmem>>, vector<1x8xf32>,
    return
  }
  func.func @transform_0(%arg0: i32) -> (i32, i32) {
    %c0_i32 = arith.constant 0 : i32
    %c0_i32_0 = arith.constant 0 : i32
    return %c0_i32, %arg0 : i32, i32
  }
  func.func @transform_1(%arg0: i32) -> (i32, i32) {
    %c0_i32 = arith.constant 0 : i32
    %c0_i32_0 = arith.constant 0 : i32
    %c0_i32_1 = arith.constant 0 : i32
    return %c0_i32, %c0_i32_0 : i32, i32
  }
  func.func @transform_2(%arg0: i32) -> (i32, i32) {
    %c0_i32 = arith.constant 0 : i32
    %c0_i32_0 = arith.constant 0 : i32
    %c0_i32_1 = arith.constant 0 : i32
    return %c0_i32, %c0_i32_0 : i32, i32
  }
  func.func @transform_3(%arg0: i32) -> (i32, i32) {
    %c0_i32 = arith.constant 0 : i32
    %c0_i32_0 = arith.constant 0 : i32
    %c0_i32_1 = arith.constant 0 : i32
    return %c0_i32, %c0_i32_0 : i32, i32
  }
  func.func @transform_4(%arg0: i32) -> (i32, i32) {
    %c0_i32 = arith.constant 0 : i32
    %c0_i32_0 = arith.constant 0 : i32
    %c0_i32_1 = arith.constant 0 : i32
    return %c0_i32, %c0_i32_0 : i32, i32
  }
  func.func @transform_5(%arg0: i32) -> (i32, i32) {
    %c0_i32 = arith.constant 0 : i32
    %c0_i32_0 = arith.constant 0 : i32
    %c0_i32_1 = arith.constant 0 : i32
    return %c0_i32, %c0_i32_0 : i32, i32
  }
  func.func @transform_6(%arg0: i32) -> (i32, i32) {
    %c0_i32 = arith.constant 0 : i32
    %c0_i32_0 = arith.constant 0 : i32
    %c0_i32_1 = arith.constant 0 : i32
    return %c0_i32, %c0_i32_0 : i32, i32
  }
  func.func @transform_7(%arg0: i32) -> (i32, i32) {
    %c0_i32 = arith.constant 0 : i32
    %c0_i32_0 = arith.constant 0 : i32
    return %c0_i32, %arg0 : i32, i32
  }
}

</mosaic_0001>

<bundles_post_ra>
// kernel: tpu_custom_call.1
= control target key start
LH: loop header
LB: loop body
LE: loop exit
PB: predicated region body
PF: predicated region fallthrough
CT: control target
= control target key end

     0   :  { %s655_s0 = inlined_call_operand.vmem [shape: f32[32,8], index: 0, kind: input, shape index: {}]   ;;  %s656_s1 = inlined_call_operand.vmem [shape: f32[32,32], index: 1, kind: input, shape index: {}]   ;;  %s657_s2 = inlined_call_operand.vmem [shape: f32[32,1], index: 2, kind: input, shape index: {}]   ;;  %s658_s3 = inlined_call_operand.vmem [shape: f32[32,32], index: 3, kind: input, shape index: {}]   ;;  %s659_s4 = inlined_call_operand.vmem [shape: f32[32,1], index: 4, kind: input, shape index: {}]   ;;  %s660_s5 = inlined_call_operand.vmem [shape: f32[32,1], index: 5, kind: input, shape index: {}]   ;;  %s661_s6 = inlined_call_operand.<no memory space> [shape: f32[1,1], index: 6, kind: input, shape index: {}]   ;;  %s662_s7 = inlined_call_operand.hbm [shape: f32[1,8], index: 7, kind: output, shape index: {}]  }
   0x1   :  { %v12_v0 = vstv %s661_s6 }
   0x2   :  { %13 = vst [vmem:[#allocation2] sm:$0x1] %v12_v0 }
   0x3   :  { %v36_v1 = vld [vmem:[%s655_s0 + $0x18] sm:$0xff]  ;;  %v35_v2 = vld [vmem:[%s655_s0 + $0x10] sm:$0xff]  ;;  %vm61_vm0 = vcmask 261120   ;;  %v29_v3 = vld [vmem:[%s656_s1] sm:$0xff]  ;;  %v527_v4 = vmov 0  }
   0x4   :  { %441 = vmatprep.subr.mxu0 %v36_v1  ;;  %471 = vset.pattern.permute.xlu0 %v527_v4  ;;  %v34_v5 = vld [vmem:[%s655_s0 + $0x8] sm:$0xff]  ;;  %v40_v6 = vld [vmem:[%s657_s2 + $0x18] sm:$0xff]  ;;  %v33_v8 = vld [vmem:[%s655_s0] sm:$0xff] }
   0x5   :  { %442 = vmatpush3.msra.mxu0 %v36_v1  ;;  %449 = vmatprep.mubr.msk.f32.mxu0 %vm61_vm0, %v29_v3  ;;  %v38_v7 = vld [vmem:[%s657_s2 + $0x8] sm:$0xff]  ;;  %v39_v9 = vld [vmem:[%s657_s2 + $0x10] sm:$0xff]  ;;  %v37_v11 = vld [vmem:[%s657_s2] sm:$0xff] }
   0x6   :  { %443 = vmatprep.subr.mxu0 %v35_v2  ;;  %58 = vperm.xlu0 %471, %v40_v6   ;;  %v30_v10 = vld [vmem:[%s656_s1 + $0x8] sm:$0xff]  ;;  %v31_v12 = vld [vmem:[%s656_s1 + $0x10] sm:$0xff] }
   0x7   :  { %444 = vmatpush3.msra.mxu0 %v35_v2  ;;  %472 = vset.pattern.permute.xlu1 %v527_v4 }
   0x8   :  { %445 = vmatprep.subr.mxu0 %v34_v5  ;;  %48 = vperm.xlu1 %472, %v38_v7  }
   0x9   :  { %446 = vmatpush3.msra.mxu0 %v34_v5 }
   0xa   :  { %447 = vmatprep.subr.mxu0 %v33_v8  ;;  %53 = vperm.xlu0 %471, %v39_v9  }
   0xb   :  { %14 = vsyncpa [#allocation4], 0  ;;  %448 = vmatpush3.msra.mxu0 %v33_v8  ;;  %v191_v13 = vld [vmem:[%s659_s4] sm:$0xff]  ;;  %v32_v14 = vld [vmem:[%s656_s1 + $0x18] sm:$0xff]  ;;  %vm368_vm1 = vcmask 64512   ;;  %vm393_vm2 = vcmask 57344  }
   0xc   :  { %450 = vmatmul.mubr.msk.f32.vlgmr.msra.gmra.mxu0 %vm61_vm0, %v30_v10  ;;  %43 = vperm.xlu1 %472, %v37_v11   ;;  %v192_v15 = vld [vmem:[%s659_s4 + $0x8] sm:$0xff]  ;;  %v193_v16 = vld [vmem:[%s659_s4 + $0x10] sm:$0xff]  ;;  %v194_v17 = vld [vmem:[%s659_s4 + $0x18] sm:$0xff] }
   0xd   :  { %452 = vmatprep.mubr.msk.f32.mxu0 %vm61_vm0, %v31_v12  ;;  %v340_v18 = vld [vmem:[%s660_s5] sm:$0xff]  ;;  %v341_v19 = vld [vmem:[%s660_s5 + $0x8] sm:$0xff]  ;;  %v342_v20 = vld [vmem:[%s660_s5 + $0x10] sm:$0xff] }
   0xe   :  { %197 = vperm.xlu0 %471, %v191_v13   ;;  %v343_v21 = vld [vmem:[%s660_s5 + $0x18] sm:$0xff]  ;;  %v382_v22 = vld [vmem:[#allocation2] sm:$0x1]  ;;  %v188_v56 = vld [vmem:[%s658_s3 + $0x8] sm:$0xff] }
   0xf   :  { %v187_v23 = vld [vmem:[%s658_s3] sm:$0xff]  ;;  %v189_v57 = vld [vmem:[%s658_s3 + $0x10] sm:$0xff]  ;;  %v190_v58 = vld [vmem:[%s658_s3 + $0x18] sm:$0xff]  ;;  %s528_s3 = smov [#allocation3]  }
  0x10   :  { %453 = vmatmul.mubr.msk.f32.gmra.mxu0 %vm61_vm0, %v32_v14  ;;  %202 = vperm.xlu1 %472, %v192_v15   ;;  %s401_s21 = sshll.u32 %s528_s3, 4  ;;  %s402_s21 = int_to_ptr.vmem [resolvable:$true] %s401_s21 }
  0x11   :  { %463 = vmatprep.mubr.msk.f32.mxu1 %vm61_vm0, %v187_v23  ;;  %s505_s22 = scalar_lea.vmem %s402_s21, 16  ;;  %s509_s23 = scalar_lea.vmem %s402_s21, 32 }
  0x12   :  { %207 = vperm.xlu0 %471, %v193_v16   ;;  %p506_p0 = scmp.ne.s32.totalorder %s402_s21, %s505_s22  ;;  %p510_p1 = scmp.lt.s32.totalorder %s402_s21, %s402_s21 }
  0x13   :  { %p511_p2 = scmp.lt.s32.totalorder %s509_s23, %s505_s22 }
  0x14   :  { %212 = vperm.xlu1 %472, %v194_v17  }
  0x15   :  { %p512_p3 = por %p511_p2, %p510_p1 }
  0x16   :  { %346 = vperm.xlu0 %471, %v340_v18  }
  0x17   :  { %p513_p4 = pnand %p512_p3, %p506_p0 }
  0x18   :  { %351 = vperm.xlu1 %472, %v341_v19  }
  0x1a   :  { %356 = vperm.xlu0 %471, %v342_v20  }
  0x1c   :  { %361 = vperm.xlu1 %472, %v343_v21  }
  0x1e   :  { %385 = vperm.xlu0 %471, %v382_v22  }
  0x81   :  { %v59_v25 = vpop.permute.xlu0 %58 }
  0x83   :  { %v49_v24 = vpop.permute.xlu1 %48 }
  0x85   :  { %v54_v35 = vpop.permute.xlu0 %53 }
  0x87   :  { %v44_v28 = vpop.permute.xlu1 %43 }
  0x89   :  { %v198_v60 = vpop.permute.xlu0 %197 }
  0x8b   :  { %v203_v59 = vpop.permute.xlu1 %202 }
  0x8d   :  { %v208_v6 = vpop.permute.xlu0 %207 }
  0x8f   :  { %v213_v2 = vpop.permute.xlu1 %212 }
  0x91   :  { %v347_v22 = vpop.permute.xlu0 %346 }
  0x93   :  { %v352_v23 = vpop.permute.xlu1 %351 }
  0xcc   :  { %v451_v26 = vpop.f32.mrf.mxu0 }
  0xcd   :  { %v146_v27 = vadd.f32 %v451_v26, %v49_v24 }
  0xce   :  { %v140_v29 = vpop.f32.mrf.mxu0 }
  0xcf   :  { %v414_v30 = vmul.f32 -1.442695, %v146_v27  ;;  %v141_v31 = vadd.f32 %v140_v29, %v44_v28 }
  0xd0   :  { %v454_v32 = vpop.f32.mrf.mxu0 }
  0xd1   :  { %v413_v33 = vmul.f32 -1.442695, %v141_v31  ;;  %v156_v34 = vadd.f32 %v454_v32, %v59_v25  ;;  %473 = vpow2.f32 %v414_v30  ;;  %v357_v32 = vpop.permute.xlu0 %356 }
  0xd2   :  { %v150_v36 = vpop.f32.mrf.mxu0 }
  0xd3   :  { %v416_v37 = vmul.f32 -1.442695, %v156_v34  ;;  %v151_v38 = vadd.f32 %v150_v36, %v54_v35  ;;  %475 = vpow2.f32 %v413_v33  ;;  %v362_v33 = vpop.permute.xlu1 %361 }
  0xd5   :  { %477 = vpow2.f32 %v416_v37  ;;  %v415_v39 = vmul.f32 -1.442695, %v151_v38 }
  0xd7   :  { %479 = vpow2.f32 %v415_v39 }
  0xde   :  { %v474_v40 = vpop.eup %473 }
  0xdf   :  { %v172_v43 = vadd.f32 1.0, %v474_v40 }
  0xe0   :  { %v476_v41 = vpop.eup %475 }
  0xe1   :  { %v171_v46 = vadd.f32 1.0, %v476_v41  ;;  %v388_v41 = vlaneseq }
  0xe2   :  { %v478_v42 = vpop.eup %477 }
  0xe3   :  { %v174_v44 = vadd.f32 1.0, %v478_v42 }
  0xe4   :  { %v480_v45 = vpop.eup %479 }
  0xe5   :  { %481 = vrcp.f32 %v174_v44  ;;  %v173_v47 = vadd.f32 1.0, %v480_v45  ;;  %v389_v44 = vshrl.u32 %v388_v41, 7 }
  0xe6   :  { %483 = vrcp.f32 %v172_v43 }
  0xe7   :  { %485 = vrcp.f32 %v173_v47  ;;  %v390_v47 = vsub.s32 0, %v389_v44 }
  0xe8   :  { %487 = vrcp.f32 %v171_v46 }
  0xf2   :  { %v482_v48 = vpop.eup %481 }
  0xf3   :  { %v484_v49 = vpop.eup %483  ;;  %v186_v50 = vmul.f32 %v482_v48, %v156_v34 }
  0xf4   :  { %v486_v51 = vpop.eup %485  ;;  %v184_v54 = vmul.f32 %v484_v49, %v146_v27  ;;  %v386_v49 = vpop.permute.xlu0 %385 }
  0xf5   :  { %v185_v52 = vmul.f32 %v486_v51, %v151_v38  ;;  %455 = vmatprep.subr.mxu1 %v186_v50  ;;  %v488_v53 = vpop.eup %487  ;;  %v391_v51 = vrot.slane %v386_v49, %v390_v47 }
  0xf6   :  { %456 = vmatpush3.msra.mxu1 %v186_v50  ;;  %v183_v55 = vmul.f32 %v488_v53, %v141_v31 }
  0xf7   :  { %457 = vmatprep.subr.mxu1 %v185_v52 }
  0xf8   :  { %458 = vmatpush3.msra.mxu1 %v185_v52 }
  0xf9   :  { %459 = vmatprep.subr.mxu1 %v184_v54 }
  0xfa   :  { %460 = vmatpush3.msra.mxu1 %v184_v54 }
  0xfb   :  { %461 = vmatprep.subr.mxu1 %v183_v55 }
  0xfc   :  { %462 = vmatpush3.msra.mxu1 %v183_v55 }
  0xfd   :  { %464 = vmatmul.mubr.msk.f32.vlgmr.msra.gmra.mxu1 %vm61_vm0, %v188_v56 }
  0xfe   :  { %466 = vmatprep.mubr.msk.f32.mxu1 %vm61_vm0, %v189_v57 }
 0x101   :  { %467 = vmatmul.mubr.msk.f32.gmra.mxu1 %vm61_vm0, %v190_v58 }
 0x1bd   :  { %v465_v61 = vpop.f32.mrf.mxu1 }
 0x1be   :  { %v299_v62 = vadd.f32 %v465_v61, %v203_v59 }
 0x1bf   :  { %v293_v63 = vpop.f32.mrf.mxu1 }
 0x1c0   :  { %v422_v0 = vmul.f32 -1.442695, %v299_v62  ;;  %v294_v1 = vadd.f32 %v293_v63, %v198_v60 }
 0x1c1   :  { %v468_v3 = vpop.f32.mrf.mxu1 }
 0x1c2   :  { %489 = vpow2.f32 %v422_v0  ;;  %v421_v4 = vmul.f32 -1.442695, %v294_v1  ;;  %v309_v5 = vadd.f32 %v468_v3, %v213_v2 }
 0x1c3   :  { %v303_v7 = vpop.f32.mrf.mxu1 }
 0x1c4   :  { %491 = vpow2.f32 %v421_v4  ;;  %v424_v8 = vmul.f32 -1.442695, %v309_v5  ;;  %v304_v9 = vadd.f32 %v303_v7, %v208_v6 }
 0x1c6   :  { %493 = vpow2.f32 %v424_v8  ;;  %v423_v10 = vmul.f32 -1.442695, %v304_v9 }
 0x1c8   :  { %495 = vpow2.f32 %v423_v10 }
 0x1cf   :  { %v490_v11 = vpop.eup %489 }
 0x1d0   :  { %v325_v12 = vadd.f32 1.0, %v490_v11 }
 0x1d1   :  { %v492_v13 = vpop.eup %491 }
 0x1d2   :  { %497 = vrcp.f32 %v325_v12  ;;  %v324_v14 = vadd.f32 1.0, %v492_v13 }
 0x1d3   :  { %v494_v15 = vpop.eup %493 }
 0x1d4   :  { %499 = vrcp.f32 %v324_v14  ;;  %v327_v16 = vadd.f32 1.0, %v494_v15 }
 0x1d5   :  { %v496_v17 = vpop.eup %495 }
 0x1d6   :  { %501 = vrcp.f32 %v327_v16  ;;  %v326_v18 = vadd.f32 1.0, %v496_v17 }
 0x1d8   :  { %503 = vrcp.f32 %v326_v18 }
 0x1df   :  { %v498_v19 = vpop.eup %497 }
 0x1e0   :  { %v337_v20 = vmul.f32 %v498_v19, %v299_v62 }
 0x1e1   :  { %v500_v21 = vpop.eup %499 }
 0x1e2   :  { %v336_v24 = vmul.f32 %v500_v21, %v294_v1  ;;  %v365_v26 = vmul.f32 %v352_v23, %v337_v20 }
 0x1e3   :  { %v502_v25 = vpop.eup %501 }
 0x1e4   :  { %v364_v27 = vmul.f32 %v347_v22, %v336_v24  ;;  %v339_v28 = vmul.f32 %v502_v25, %v309_v5  ;;  %v370_v34 = vsel %vm368_vm1, %v365_v26, 0.0 }
 0x1e5   :  { %v504_v29 = vpop.eup %503 }
 0x1e6   :  { %v369_v30 = vsel %vm368_vm1, %v364_v27, 0.0  ;;  %v338_v31 = vmul.f32 %v504_v29, %v304_v9  ;;  %v367_v35 = vmul.f32 %v362_v33, %v339_v28 }
 0x1e7   :  { %v371_v37 = vadd.f32 %v370_v34, %v369_v30 }
 0x1e8   :  { %v366_v36 = vmul.f32 %v357_v32, %v338_v31  ;;  %v374_v40 = vsel %vm368_vm1, %v367_v35, 0.0 }
 0x1ea   :  { %v372_v38 = vsel %vm368_vm1, %v366_v36, 0.0 }
 0x1eb   :  { %v373_v39 = vadd.f32 %v372_v38, %v371_v37 }
 0x1ed   :  { %v375_v42 = vadd.f32 %v374_v40, %v373_v39 }
 0x1ef   :  { %v376_v43 = vrot.slane %v375_v42, 4 }
 0x1f1   :  { %v377_v45 = vadd.f32 %v376_v43, %v375_v42 }
 0x1f3   :  { %v378_v46 = vrot.slane %v377_v45, 2 }
 0x1f5   :  { %v379_v48 = vadd.f32 %v378_v46, %v377_v45 }
 0x1f7   :  { %v380_v50 = vrot.slane %v379_v48, 1 }
 0x1f9   :  { %v381_v52 = vadd.f32 %v380_v50, %v379_v48 }
 0x1fb   :  { %v392_v53 = vadd.f32 %v391_v51, %v381_v52 }
 0x1fd   :  { %394 = vst.msk [vmem:[#allocation3] sm:$0x1] %vm393_vm2, %v392_v53 }
 0x1fe   :  { %516 = shalt.err (!%p513_p4)
}
 0x1ff   :  { %404 = dma.vmem_to_hbm [thread:$0]  %s402_s21, 16, %s662_s7, [#allocation4]  }
 0x200   :  { %525 = dma.done.wait [#allocation4], 16  }
 0x201   :  { %526 = vsyncadd [#allocation4], 4294967280 }
 0x202   :  { %408 = vsyncpa [#allocation4], 1 }

</bundles_post_ra>
